<compile_context>
chip_gen: v7x
topology: tpu7x:2x2x1
jax: 0.10.0
libtpu: 0.0.40
codegen_flags: <defaults>
</compile_context>

<pallas_src>
import functools

import jax
import jax.numpy as jnp
from jax.experimental import pallas as pl
from jax.experimental.pallas import tpu as pltpu


def _round_up(x, m):
    return ((x + m - 1) // m) * m


def decoder_dv_kernel(x_ref, w1_ref, b1_ref, w2_ref, b2_ref, o_ref):
    # One batch tile per grid step; the whole MLP (both matmuls + LeakyReLU +
    # Sigmoid) runs in a single body. Weights are identical every step, so
    # their blocks stay resident in VMEM.
    x = x_ref[...]                                     # [TB, D_in]  f32
    w1 = w1_ref[...]                                   # [D_in, H]
    b1 = b1_ref[...]                                   # [1, H]
    w2 = w2_ref[...]                                   # [H, D_out]
    b2 = b2_ref[...]                                   # [1, D_out]

    # Linear 1 (MXU) + bias
    h = jnp.dot(x, w1, preferred_element_type=jnp.float32) + b1
    # LeakyReLU (default negative_slope = 0.01), VPU
    h = jnp.where(h > 0, h, 0.01 * h)
    # Linear 2 (MXU) + bias
    y = jnp.dot(h, w2, preferred_element_type=jnp.float32) + b2
    # Exact sigmoid (exp on EUP); kernel is DMA-bound so this is free and
    # matches the PyTorch reference bit-for-bit tolerances.
    o_ref[...] = jax.nn.sigmoid(y)


@functools.partial(jax.jit, static_argnames=("max_tb",))
def decoder_dv_forward(x, w1, b1, w2, b2, *, max_tb=2048):
    B, d_in = x.shape
    h_dim, d_out = w2.shape

    # --- Balanced batch tiling ---------------------------------------------
    # Target enough tiles to (a) respect max_tb and (b) give v7x's second
    # TensorCore work whenever B > 8; then pick the smallest multiple-of-8
    # tile that covers B with those tiles (minimizes tail padding).
    n_target = max(-(-B // max_tb), 2 if B > 8 else 1)
    tb = _round_up(-(-B // n_target), 8)
    n_tiles = -(-B // tb)
    b_pad = n_tiles * tb
    xp = jnp.pad(x, ((0, b_pad - B), (0, 0))) if b_pad != B else x

    out = pl.pallas_call(
        decoder_dv_kernel,
        out_shape=jax.ShapeDtypeStruct((b_pad, d_out), jnp.float32),
        grid=(n_tiles,),
        in_specs=[
            # x: one batch tile per grid step.
            pl.BlockSpec((tb, d_in), lambda i: (i, 0)),
            # Weights / biases: constant index_map -> resident across the grid.
            pl.BlockSpec((d_in, h_dim), lambda i: (0, 0)),
            pl.BlockSpec((1, h_dim), lambda i: (0, 0)),
            pl.BlockSpec((h_dim, d_out), lambda i: (0, 0)),
            pl.BlockSpec((1, d_out), lambda i: (0, 0)),
        ],
        # d_out (50) equals the full array dim, so the (8,128) rule is met
        # without lane padding; stores stay narrow but HBM writeback is the
        # true bottleneck and drops ~2.5x vs the padded version.
        out_specs=pl.BlockSpec((tb, d_out), lambda i: (i, 0)),
        compiler_params=pltpu.CompilerParams(
            # Batch tiles are independent -> shard across v7x's 2 TensorCores.
            dimension_semantics=("parallel",),
        ),
    )(xp, w1, b1, w2, b2)

    # Strip batch padding only if any was added (avoid an XLA copy otherwise).
    if b_pad != B:
        out = out[:B]
    return out


def reference_forward(x, w1, b1, w2, b2):
    h = x @ w1 + b1
    h = jnp.where(h > 0, h, 0.01 * h)
    y = h @ w2 + b2
    return jax.nn.sigmoid(y)


def _check(batch, key):
    embedding_dim = 10
    output_dim = 50
    hidden_dim = 25

    kx, k1, kb1, k2, kb2 = jax.random.split(key, 5)
    x = jax.random.normal(kx, (batch, embedding_dim), dtype=jnp.float32)
    w1 = jax.random.normal(k1, (embedding_dim, hidden_dim), dtype=jnp.float32) * 0.1
    b1 = jax.random.normal(kb1, (1, hidden_dim), dtype=jnp.float32) * 0.1
    w2 = jax.random.normal(k2, (hidden_dim, output_dim), dtype=jnp.float32) * 0.1
    b2 = jax.random.normal(kb2, (1, output_dim), dtype=jnp.float32) * 0.1

    out = decoder_dv_forward(x, w1, b1, w2, b2)
    out = jax.block_until_ready(out)
    ref = reference_forward(x, w1, b1, w2, b2)

    assert out.shape == (batch, output_dim), out.shape
    assert jnp.allclose(out, ref, atol=1e-5, rtol=1e-5), "mismatch vs reference"


if __name__ == "__main__":
    key = jax.random.PRNGKey(0)
    k_a, k_b = jax.random.split(key, 2)

    # Small aligned batch (single tile).
    _check(batch=8, key=k_a)
    # Unaligned batch exercising the multi-tile + batch-padding path.
    _check(batch=20, key=k_b)

    print("KERNEL_OK")
</pallas_src>

<mosaic_0001>
module attributes {stable_mosaic.version = 11 : i64} {
  func.func @decoder_dv_kernel(%arg0: i32, %arg1: memref<8x10xf32, #tpu.memory_space<vmem>>, %arg2: memref<10x25xf32, #tpu.memory_space<vmem>>, %arg3: memref<1x25xf32, #tpu.memory_space<vmem>>, %arg4: memref<25x50xf32, #tpu.memory_space<vmem>>, %arg5: memref<1x50xf32, #tpu.memory_space<vmem>>, %arg6: memref<8x50xf32, #tpu.memory_space<vmem>>) attributes {dimension_semantics = [#tpu.dimension_semantics<parallel>], iteration_bounds = array<i64: 1>, scalar_prefetch = 0 : i64, scratch_operands = 0 : i64, tpu.core_type = #tpu.core_type<tc>, window_params = [{transform_indices = @transform_0, window_bounds = array<i64: 8, 10>}, {pipeline_mode = #tpu.pipeline_mode<synchronous>, transform_indices = @transform_1, window_bounds = array<i64: 10, 25>}, {pipeline_mode = #tpu.pipeline_mode<synchronous>, transform_indices = @transform_2, window_bounds = array<i64: 1, 25>}, {pipeline_mode = #tpu.pipeline_mode<synchronous>, transform_indices = @transform_3, window_bounds = array<i64: 25, 50>}, {pipeline_mode = #tpu.pipeline_mode<synchronous>, transform_indices = @transform_4, window_bounds = array<i64: 1, 50>}, {transform_indices = @transform_5, window_bounds = array<i64: 8, 50>}]} {
    %c0 = arith.constant 0 : index
    %c0_0 = arith.constant 0 : index
    %0 = vector.load %arg1[%c0, %c0_0] : memref<8x10xf32, #tpu.memory_space<vmem>>, vector<8x10xf32>
    %c0_1 = arith.constant 0 : index
    %c0_2 = arith.constant 0 : index
    %1 = vector.load %arg2[%c0_1, %c0_2] : memref<10x25xf32, #tpu.memory_space<vmem>>, vector<10x25xf32>
    %c0_3 = arith.constant 0 : index
    %c0_4 = arith.constant 0 : index
    %2 = vector.load %arg3[%c0_3, %c0_4] : memref<1x25xf32, #tpu.memory_space<vmem>>, vector<1x25xf32>
    %c0_5 = arith.constant 0 : index
    %c0_6 = arith.constant 0 : index
    %3 = vector.load %arg4[%c0_5, %c0_6] : memref<25x50xf32, #tpu.memory_space<vmem>>, vector<25x50xf32>
    %c0_7 = arith.constant 0 : index
    %c0_8 = arith.constant 0 : index
    %4 = vector.load %arg5[%c0_7, %c0_8] : memref<1x50xf32, #tpu.memory_space<vmem>>, vector<1x50xf32>
    %cst = arith.constant dense<0.000000e+00> : vector<8x25xf32>
    %5 = tpu.matmul %0, %1, %cst {dimension_numbers = #tpu.dot_dimension_numbers<[1], [0], [0], [1], [0, 0, 1, 1], [], []>} : vector<8x10xf32>, vector<10x25xf32>, vector<8x25xf32> -> vector<8x25xf32>
    %6 = vector.broadcast %2 : vector<1x25xf32> to vector<8x25xf32>
    %7 = arith.addf %5, %6 : vector<8x25xf32>
    %cst_9 = arith.constant 0.000000e+00 : f32
    %8 = vector.broadcast %cst_9 : f32 to vector<8x25xf32>
    %9 = arith.cmpf ogt, %7, %8 : vector<8x25xf32>
    %cst_10 = arith.constant 0.00999999977 : f32
    %10 = vector.broadcast %cst_10 : f32 to vector<8x25xf32>
    %11 = arith.mulf %10, %7 : vector<8x25xf32>
    %12 = arith.select %9, %7, %11 : vector<8x25xi1>, vector<8x25xf32>
    %cst_11 = arith.constant dense<0.000000e+00> : vector<8x50xf32>
    %13 = tpu.matmul %12, %3, %cst_11 {dimension_numbers = #tpu.dot_dimension_numbers<[1], [0], [0], [1], [0, 0, 1, 1], [], []>} : vector<8x25xf32>, vector<25x50xf32>, vector<8x50xf32> -> vector<8x50xf32>
    %14 = vector.broadcast %4 : vector<1x50xf32> to vector<8x50xf32>
    %15 = arith.addf %13, %14 : vector<8x50xf32>
    %16 = arith.negf %15 : vector<8x50xf32>
    %17 = math.exp %16 : vector<8x50xf32>
    %cst_12 = arith.constant 1.000000e+00 : f32
    %18 = vector.broadcast %cst_12 : f32 to vector<8x50xf32>
    %19 = arith.addf %18, %17 : vector<8x50xf32>
    %20 = arith.divf %18, %19 : vector<8x50xf32>
    %c0_13 = arith.constant 0 : index
    %c0_14 = arith.constant 0 : index
    %21 = vector.load %arg6[%c0_13, %c0_14] : memref<8x50xf32, #tpu.memory_space<vmem>>, vector<8x50xf32>
    tpu.vector_store %arg6[%c0_13, %c0_14], %20 {strides = array<i32>} : memref<8x50xf32, #tpu.memory_space<vmem>>, vector<8x50xf32>,
    return
  }
  func.func @transform_0(%arg0: i32) -> (i32, i32) {
    %c0_i32 = arith.constant 0 : i32
    %c0_i32_0 = arith.constant 0 : i32
    return %arg0, %c0_i32 : i32, i32
  }
  func.func @transform_1(%arg0: i32) -> (i32, i32) {
    %c0_i32 = arith.constant 0 : i32
    %c0_i32_0 = arith.constant 0 : i32
    %c0_i32_1 = arith.constant 0 : i32
    return %c0_i32, %c0_i32_0 : i32, i32
  }
  func.func @transform_2(%arg0: i32) -> (i32, i32) {
    %c0_i32 = arith.constant 0 : i32
    %c0_i32_0 = arith.constant 0 : i32
    %c0_i32_1 = arith.constant 0 : i32
    return %c0_i32, %c0_i32_0 : i32, i32
  }
  func.func @transform_3(%arg0: i32) -> (i32, i32) {
    %c0_i32 = arith.constant 0 : i32
    %c0_i32_0 = arith.constant 0 : i32
    %c0_i32_1 = arith.constant 0 : i32
    return %c0_i32, %c0_i32_0 : i32, i32
  }
  func.func @transform_4(%arg0: i32) -> (i32, i32) {
    %c0_i32 = arith.constant 0 : i32
    %c0_i32_0 = arith.constant 0 : i32
    %c0_i32_1 = arith.constant 0 : i32
    return %c0_i32, %c0_i32_0 : i32, i32
  }
  func.func @transform_5(%arg0: i32) -> (i32, i32) {
    %c0_i32 = arith.constant 0 : i32
    %c0_i32_0 = arith.constant 0 : i32
    return %arg0, %c0_i32 : i32, i32
  }
}

</mosaic_0001>

<bundles_post_ra>
// kernel: decoder_dv_forward.1
= control target key start
LH: loop header
LB: loop body
LE: loop exit
PB: predicated region body
PF: predicated region fallthrough
CT: control target
= control target key end

     0   :  { %10 = vsyncpa [#allocation3], 0  ;;  %s518_s0 = inlined_call_operand.hbm [shape: f32[8,10], index: 0, kind: input, shape index: {}]   ;;  %s519_s1 = inlined_call_operand.hbm [shape: f32[10,25], index: 1, kind: input, shape index: {}]   ;;  %s520_s2 = inlined_call_operand.vmem [shape: f32[1,25], index: 2, kind: input, shape index: {}]   ;;  %s521_s3 = inlined_call_operand.hbm [shape: f32[25,50], index: 3, kind: input, shape index: {}]   ;;  %s522_s4 = inlined_call_operand.vmem [shape: f32[1,50], index: 4, kind: input, shape index: {}]   ;;  %s523_s5 = inlined_call_operand.hbm [shape: f32[8,50], index: 5, kind: output, shape index: {}]  }
   0x1   :  { %11 = vsyncpa [#allocation6], 0 }
   0x2   :  { %12 = vsyncpa [#allocation4], 0  ;;  %s416_s18 = smov [#allocation5]   ;;  %s322_s22 = scalar_lea.hbm %s519_s1, 256 }
   0x3   :  { %s28_s19 = sshll.u32 %s416_s18, 4  ;;  %p323_p0 = scmp.ne.s32.totalorder %s519_s1, %s322_s22  ;;  %s29_s19 = int_to_ptr.vmem [resolvable:$true] %s28_s19 }
   0x4   :  { %p326_p1 = scmp.lt.u32.totalorder %s322_s22, %s519_s1 }
   0x6   :  { %p328_p2 = pnand %p326_p1, %p323_p0 }
   0x8   :  { %331 = shalt.err (!%p328_p2)
}
   0x9   :  { %s332_s27 = scalar_lea.vmem %s29_s19, 256  ;;  %p337_p4 = scmp.lt.s32.totalorder %s29_s19, %s29_s19 }
   0xa   :  { %p333_p3 = scmp.ne.s32.totalorder %s29_s19, %s332_s27  ;;  %p338_p5 = scmp.lt.s32.totalorder %s332_s27, %s332_s27 }
   0xc   :  { %p339_p6 = por %p338_p5, %p337_p4 }
   0xe   :  { %p340_p7 = pnand %p339_p6, %p333_p3 }
  0x10   :  { %343 = shalt.err (!%p340_p7)
}
  0x11   :  { %s417_s28 = smov 128   ;;  %s418_s29 = smov 8  }
  0x12   :  { %34 = dma.hbm_to_vmem [thread:$0]  %s519_s1, 256, %s29_s19, [#allocation6], %s417_s28, %s417_s28, %s418_s29  }
  0x13   :  { %s419_s7 = smov [#allocation2]   ;;  %s420_s9 = smov [#allocation7]  }
  0x14   :  { %s19_s8 = sshll.u32 %s419_s7, 4  ;;  %s42_s10 = sshll.u32 %s420_s9, 4  ;;  %s20_s8 = int_to_ptr.vmem [resolvable:$true] %s19_s8  ;;  %s43_s10 = int_to_ptr.vmem [resolvable:$true] %s42_s10 }
  0x15   :  { %s344_s13 = scalar_lea.hbm %s518_s0, 128 }
  0x16   :  { %p345_p8 = scmp.ne.s32.totalorder %s518_s0, %s344_s13  ;;  %p348_p9 = scmp.lt.u32.totalorder %s344_s13, %s518_s0 }
  0x18   :  { %p350_p10 = pnand %p348_p9, %p345_p8 }
  0x1a   :  { %353 = shalt.err (!%p350_p10)
}
  0x1b   :  { %s354_s1 = scalar_lea.vmem %s20_s8, 128  ;;  %p359_p12 = scmp.lt.s32.totalorder %s20_s8, %s20_s8 }
  0x1c   :  { %p355_p11 = scmp.ne.s32.totalorder %s20_s8, %s354_s1  ;;  %p360_p13 = scmp.lt.s32.totalorder %s354_s1, %s354_s1 }
  0x1e   :  { %p361_p0 = por %p360_p13, %p359_p12 }
  0x20   :  { %p362_p1 = pnand %p361_p0, %p355_p11 }
  0x22   :  { %365 = shalt.err (!%p362_p1)
}
  0x23   :  { %22 = dma.hbm_to_vmem [thread:$0]  %s518_s0, 128, %s20_s8, [#allocation3]  }
  0x24   :  { %s366_s22 = scalar_lea.hbm %s521_s3, 512 }
  0x25   :  { %p367_p2 = scmp.ne.s32.totalorder %s521_s3, %s366_s22  ;;  %p370_p3 = scmp.lt.u32.totalorder %s366_s22, %s521_s3 }
  0x27   :  { %p372_p4 = pnand %p370_p3, %p367_p2 }
  0x29   :  { %375 = shalt.err (!%p372_p4)
}
  0x2a   :  { %s376_s27 = scalar_lea.vmem %s43_s10, 512  ;;  %p381_p6 = scmp.lt.s32.totalorder %s43_s10, %s43_s10 }
  0x2b   :  { %p377_p5 = scmp.ne.s32.totalorder %s43_s10, %s376_s27  ;;  %p382_p7 = scmp.lt.s32.totalorder %s376_s27, %s376_s27 }
  0x2d   :  { %p383_p8 = por %p382_p7, %p381_p6 }
  0x2f   :  { %p384_p9 = pnand %p383_p8, %p377_p5 }
  0x31   :  { %387 = shalt.err (!%p384_p9)
}
  0x32   :  { %48 = dma.hbm_to_vmem [thread:$0]  %s521_s3, 512, %s43_s10, [#allocation6], %s417_s28, %s417_s28, %s418_s29  }
  0x33   :  { %410 = dma.done.wait [#allocation3], 128  }
  0x34   :  { %411 = vsyncadd [#allocation3], 4294967168 }
  0x35   :  { %412 = dma.done.wait [#allocation6], 768  }
  0x36   :  { %413 = vsyncadd [#allocation6], 4294966528  ;;  %v421_v0 = vmov 0.0|0.0   ;;  %vm422_vm0 = vmmov 0   ;;  %v423_v1 = vmov 0.0   ;;  %vm79_vm1 = vcmask 1041408  }
  0x37   :  { %297 = vmatprep.subr.bf16.mxu0 %v421_v0  ;;  %301 = vmatprep.subr.bf16.mxu1 %v421_v0  ;;  %v61_v2 = vld [vmem:[#allocation5] sm:$0xff]  ;;  %v62_v3 = vld [vmem:[#allocation5 + $0x8] sm:$0x3]  ;;  %vm424_vm2 = vmmov 1   ;;  %v64_v5 = vld [vmem:[#allocation7] sm:$0xff]  ;;  %vm75_vm4 = vcmask 80896  }
  0x38   :  { %283 = vmatprep.mubr.msk.f32.mxu0 %vm422_vm0, %v423_v1  ;;  %294 = vmatprep.mubr.msk.f32.mxu1 %vm422_vm0, %v423_v1  ;;  %vm299_vm3 = vmpackc.low %vm79_vm1, %vm424_vm2  ;;  %v298_v4 = vpack.c.bf16 %v62_v3, %v61_v2  ;;  %v65_v6 = vld [vmem:[#allocation7 + $0x8] sm:$0xff]  ;;  %v66_v9 = vld [vmem:[#allocation7 + $0x10] sm:$0xff]  ;;  %vm166_vm5 = vcmask 1040384   ;;  %vm162_vm8 = vcmask 203776   ;;  %vm246_vm9 = vcmask 408576  }
  0x39   :  { %v302_v7 = vpack.c.bf16 %v65_v6, %v64_v5  ;;  %v60_v8 = vld [vmem:[#allocation2] sm:$0xff]  ;;  %v67_v10 = vld [vmem:[#allocation7 + $0x18] sm:$0x1]  ;;  %vm306_vm6 = vmpackc.low %vm166_vm5, %vm424_vm2 }
  0x3a   :  { %300 = vmatpush3.bf16.msk.msra.mxu0 %vm299_vm3, %v298_v4  ;;  %v305_v11 = vpack.c.bf16 %v67_v10, %v66_v9  ;;  %v264_v12 = vld [vmem:[%s520_s2] ss:$0 sm:$0xff]  ;;  %s425_s2 = smov [#allocation8]  }
  0x3b   :  { %303 = vmatpush3.bf16.msra.mxu1 %v302_v7  ;;  %v267_v18 = vld [vmem:[%s522_s4] ss:$0 sm:$0xff]  ;;  %s254_s7 = sshll.u32 %s425_s2, 4  ;;  %s255_s7 = int_to_ptr.vmem [resolvable:$true] %s254_s7 }
  0x3c   :  { %304 = vmatprep.subr.bf16.mxu1 %v421_v0  ;;  %s388_s8 = scalar_lea.vmem %s255_s7, 128  ;;  %p393_p11 = scmp.lt.s32.totalorder %s255_s7, %s255_s7 }
  0x3d   :  { %284 = vmatmul.mubr.msk.f32.vlgmr.msra.gmra.mrb[0].mxu0 %vm75_vm4, %v60_v8  ;;  %p389_p10 = scmp.ne.s32.totalorder %s255_s7, %s388_s8  ;;  %p394_p12 = scmp.lt.s32.totalorder %s388_s8, %s388_s8 }
  0x3f   :  { %307 = vmatpush3.bf16.msk.msra.mxu1 %vm306_vm6, %v305_v11  ;;  %p395_p13 = por %p394_p12, %p393_p11 }
  0x41   :  { %p396_p0 = pnand %p395_p13, %p389_p10 }
 0x110   :  { %v149_v13 = vpop.f32.mrb[0].mxu0 }
 0x111   :  { %v150_v14 = vadd.f32 %v264_v12, %v149_v13  ;;  %v285_v15 = vpop.f32.mrb[1].mxu0 }
 0x113   :  { %vm153_vm7 = vcmp.gt.f32.partialorder %v150_v14, 0.0  ;;  %v154_v16 = vmul.f32 0.01, %v150_v14 }
 0x115   :  { %v155_v17 = vsel %vm153_vm7, %v150_v14, %v154_v16 }
 0x116   :  { %295 = vmatmul.mubr.msk.f32.vlgmr.msra.gmra.mrb[0].mxu1 %vm162_vm8, %v155_v17 }
 0x1e9   :  { %v236_v19 = vpop.f32.mrb[0].mxu1 }
 0x1ea   :  { %v237_v20 = vadd.f32 %v267_v18, %v236_v19  ;;  %v296_v21 = vpop.f32.mrb[1].mxu1 }
 0x1ec   :  { %v270_v22 = vmul.f32 -1.442695, %v237_v20 }
 0x1ee   :  { %318 = vpow2.f32 %v270_v22 }
 0x1f8   :  { %v319_v23 = vpop.eup %318 }
 0x1f9   :  { %v243_v24 = vadd.f32 1.0, %v319_v23 }
 0x1fb   :  { %320 = vrcp.f32 %v243_v24 }
 0x205   :  { %v321_v25 = vpop.eup %320 }
 0x206   :  { %247 = vst.msk [vmem:[#allocation8] sm:$0xff] %vm246_vm9, %v321_v25 }
 0x207   :  { %399 = shalt.err (!%p396_p0)
}
 0x208   :  { %s400_s10 = scalar_lea.hbm %s523_s5, 128 }
 0x209   :  { %p401_p1 = scmp.ne.s32.totalorder %s523_s5, %s400_s10  ;;  %p404_p2 = scmp.lt.u32.totalorder %s400_s10, %s523_s5 }
 0x20b   :  { %p406_p3 = pnand %p404_p2, %p401_p1 }
 0x20d   :  { %409 = shalt.err (!%p406_p3)
}
 0x20e   :  { %257 = dma.vmem_to_hbm [thread:$0]  %s255_s7, 128, %s523_s5, [#allocation4]  }
 0x20f   :  { %414 = dma.done.wait [#allocation4], 128  }
 0x210   :  { %415 = vsyncadd [#allocation4], 4294967168 }
 0x211   :  { %261 = vsyncpa [#allocation3], 1 }
 0x212   :  { %262 = vsyncpa [#allocation6], 1 }
 0x213   :  { %263 = vsyncpa [#allocation4], 1 }

</bundles_post_ra>
